<compile_context>
chip_gen: v5e
topology: v5e:2x2
jax: 0.10.0
libtpu: 0.0.40
codegen_flags: <defaults>
</compile_context>

<pallas_src>
import jax
import jax.numpy as jnp
import numpy as np
from jax.experimental import pallas as pl
from jax.experimental.pallas import tpu as pltpu

# ---- problem sizes (small, consistent with the module) ----
B, S, L = 2, 3, 5          # batch, sentences per video, words per sentence
D_TXT = 32                 # textual feature dim
D_VIS = 20                 # visual feature dim
T = 16                     # input frames
H = 32                     # hidden size (= PRED_INPUT_SIZE)
POOL = 2                   # frame avg-pool stride
N = T // POOL              # proposal map side
P = N * N                  # flattened proposal map (64)
BP = B * P                 # batch packed into lanes (128 = full vreg width)
N_REF = 2


# ----------------------------------------------------------------------------
# Pallas kernel: fusion + map conv + stacked pred heads + merged-max reduction
# grid = (S,); batch lives on the lane axis (lane = b*P + p).
# ----------------------------------------------------------------------------
def _dual_mil_kernel(tmp_mask_ref,                 # SMEM (B,S) int32 (scalar prefetch)
                     txt_ref,                      # (1, H, BP) per-sentence text
                     maph_ref,                     # (H, BP)    proposal-map features
                     mask_ref,                     # (1, BP)    proposal validity mask
                     wfv_ref, bfv_ref,             # (H,H), (H,1)  fusion 1x1 conv
                     wmap_ref, bmap_ref,           # (H,H), (H,1)  map 1x1 conv
                     wp3_ref, bp3_ref,             # (3,H), (3,1)  stacked pred heads
                     pred3_ref,                    # out (1, 3, BP)
                     merged_ref,                   # out (1, BP), resident across s
                     vis_scr):                     # VMEM scratch (H, BP)
    s = pl.program_id(0)
    mask = mask_ref[...]                           # (1, BP)

    # ---- batch-invariant fusion conv: compute once at s == 0, reuse after.
    @pl.when(s == 0)
    def _():
        vis_scr[...] = jnp.tanh(
            jnp.dot(wfv_ref[...], maph_ref[...],
                    preferred_element_type=jnp.float32) + bfv_ref[...])
        merged_ref[...] = jnp.full((1, BP), -1e30, jnp.float32)

    vis = vis_scr[...]                             # (H, BP)
    txt = txt_ref[0]                               # (H, BP)

    # ---- fusion: txt * vis, L2-normalize over channels (rsqrt -> EUP), mask
    fused = vis * txt
    sumsq = jnp.sum(fused * fused, axis=0, keepdims=True)        # (1, BP)
    fused = fused * jax.lax.rsqrt(jnp.maximum(sumsq, 1e-24)) * mask

    # ---- map layer: ReLU(1x1 conv) masked
    mapped = jnp.maximum(
        jnp.dot(wmap_ref[...], fused, preferred_element_type=jnp.float32)
        + bmap_ref[...], 0.0) * mask                             # (H, BP)

    # ---- stacked prediction heads: single (3,H)@(H,BP); sigmoid on head 0 only
    logits = jnp.dot(wp3_ref[...], mapped,
                     preferred_element_type=jnp.float32) + bp3_ref[...]   # (3, BP)
    row = jax.lax.broadcasted_iota(jnp.int32, (3, BP), 0)
    pred3 = jnp.where(row == 0, jax.nn.sigmoid(logits), logits) * mask
    pred3_ref[0] = pred3

    # ---- merged prediction: running max over valid sentences, per batch half
    lane = jax.lax.broadcasted_iota(jnp.int32, (1, BP), 1)
    valid = jnp.zeros((1, BP), jnp.bool_)
    for b in range(B):                             # B = 2, unrolled at trace time
        vb = tmp_mask_ref[b, s] > 0                # cheap SMEM scalar
        half = jnp.logical_and(lane >= b * P, lane < (b + 1) * P)
        valid = jnp.logical_or(valid, jnp.logical_and(half, vb))
    pred0 = pred3[0:1, :]                          # sigmoid head (1, BP)
    merged_ref[...] = jnp.where(valid,
                                jnp.maximum(merged_ref[...], pred0),
                                merged_ref[...])


# ----------------------------------------------------------------------------
# Glue (plain JAX): frame layer, prop layer (log-step cummax), text pooling
# ----------------------------------------------------------------------------
def _encode(params, textual_input, textual_mask, visual_input):
    # frame layer: Conv1d(k=1) + ReLU + AvgPool1d(POOL);  visual_input is (B,T,D_VIS)
    vis = jnp.einsum('btv,hv->bht', visual_input, params['w_frame']) \
        + params['b_frame'][None, :, None]
    vis = jnp.maximum(vis, 0.0)
    vis = vis.reshape(B, H, N, POOL).mean(-1)                      # (B, H, N)

    # prop layer: map_h[:, :, i, j] = max(vis[:, :, i:j+1]) for j >= i, else 0.
    # Vectorized log-step cummax instead of an N*N python loop of tiny slices.
    # NOTE: lax.cummax requires a non-negative axis (XLA rejects axis=-1).
    triu = jnp.triu(jnp.ones((N, N), jnp.float32))
    triu_b = triu.astype(bool)[None, None]                          # (1,1,N,N)
    X = jnp.where(triu_b, vis[:, :, None, :], -jnp.inf)             # (B,H,N,N)
    map_h = jnp.where(triu_b, jax.lax.cummax(X, axis=3), 0.0)       # (B,H,N,N)
    map_mask = jnp.broadcast_to(triu[None, None], (B, 1, N, N))

    # text encoding: masked mean over words + Linear + tanh
    tm = textual_mask                                               # (B, S, L, 1)
    txt_pool = (textual_input * tm).sum(2) / jnp.maximum(tm.sum(2), 1.0)  # (B,S,D_TXT)
    txt_h = jnp.tanh(txt_pool @ params['w_txt'] + params['b_txt'])        # (B, S, H)

    # per-sentence validity (same as torch: sum(textual_mask, (-2,-1)) > 0)
    tmp_mask = (tm.sum((-2, -1)) > 0).astype(jnp.int32)             # (B, S)

    return (txt_h, tmp_mask, map_h.reshape(B, H, P),
            map_mask.reshape(B, 1, P), map_mask)


# ----------------------------------------------------------------------------
# Pallas wrapper
# ----------------------------------------------------------------------------
def dual_mil_pallas(params, textual_input, textual_mask, visual_input):
    txt_h, tmp_mask, map_h_flat, map_mask_flat, map_mask = _encode(
        params, textual_input, textual_mask, visual_input)

    # lane-pack the batch: lane = b * P + p  (B*P = 128 -> lane-dense vregs)
    maph_lane = jnp.transpose(map_h_flat, (1, 0, 2)).reshape(H, BP)      # (H, BP)
    mask_lane = jnp.transpose(map_mask_flat, (1, 0, 2)).reshape(1, BP)   # (1, BP)
    txt_lane = jnp.broadcast_to(
        jnp.transpose(txt_h, (1, 2, 0))[:, :, :, None], (S, H, B, P)
    ).reshape(S, H, BP)                                                  # (S, H, BP)

    # stack the three prediction heads into one weight / bias
    w_pred3 = jnp.concatenate(
        [params['w_pred'], params['w_pred1'], params['w_pred2']], axis=0)   # (3, H)
    b_pred3 = jnp.concatenate(
        [params['b_pred'], params['b_pred1'], params['b_pred2']], axis=0)   # (3, 1)

    out_shapes = (
        jax.ShapeDtypeStruct((S, 3, BP), jnp.float32),   # stacked predictions
        jax.ShapeDtypeStruct((1, BP), jnp.float32),      # merged prediction
    )

    grid_spec = pltpu.PrefetchScalarGridSpec(
        num_scalar_prefetch=1,
        grid=(S,),
        in_specs=[
            pl.BlockSpec((1, H, BP), lambda s, tm_: (s, 0, 0)),   # txt (per sentence)
            pl.BlockSpec((H, BP), lambda s, tm_: (0, 0)),         # map_h (shared)
            pl.BlockSpec((1, BP), lambda s, tm_: (0, 0)),         # map_mask
            pl.BlockSpec((H, H), lambda s, tm_: (0, 0)),          # w_fv
            pl.BlockSpec((H, 1), lambda s, tm_: (0, 0)),          # b_fv
            pl.BlockSpec((H, H), lambda s, tm_: (0, 0)),          # w_map
            pl.BlockSpec((H, 1), lambda s, tm_: (0, 0)),          # b_map
            pl.BlockSpec((3, H), lambda s, tm_: (0, 0)),          # w_pred (stacked)
            pl.BlockSpec((3, 1), lambda s, tm_: (0, 0)),          # b_pred (stacked)
        ],
        out_specs=(
            pl.BlockSpec((1, 3, BP), lambda s, tm_: (s, 0, 0)),
            pl.BlockSpec((1, BP), lambda s, tm_: (0, 0)),         # accumulator across s
        ),
        scratch_shapes=[pltpu.VMEM((H, BP), jnp.float32)],        # hoisted fusion conv
    )

    # The single grid axis carries the merged-max accumulator -> "arbitrary".
    # TODO(synk): on v7x a >=2-sized "parallel" axis would engage both TensorCores;
    # not worth splitting this 3-step, few-KB kernel.
    pred3_all, merged = pl.pallas_call(
        _dual_mil_kernel,
        out_shape=out_shapes,
        grid_spec=grid_spec,
        compiler_params=pltpu.CompilerParams(
            dimension_semantics=("arbitrary",)),
    )(tmp_mask, txt_lane, maph_lane, mask_lane,
      params['w_fv'], params['b_fv'],
      params['w_map'], params['b_map'],
      w_pred3, b_pred3)

    # unpack lanes back to (B, S, 1, N, N)
    pred_bs = jnp.transpose(pred3_all.reshape(S, 3, B, P), (2, 0, 1, 3))  # (B,S,3,P)
    prediction = pred_bs[:, :, 0:1, :].reshape(B, S, 1, N, N)
    prediction_1 = pred_bs[:, :, 1:2, :].reshape(B, S, 1, N, N)
    prediction_2 = pred_bs[:, :, 2:3, :].reshape(B, S, 1, N, N)
    merged_prediction = merged.reshape(B, 1, N, N)
    return merged_prediction, map_mask, [prediction, prediction_1, prediction_2]


# ----------------------------------------------------------------------------
# Pure-JAX reference (same math, batch-major, no Pallas) used for verification
# ----------------------------------------------------------------------------
def dual_mil_reference(params, textual_input, textual_mask, visual_input):
    txt_h, tmp_mask, map_h_flat, map_mask_flat, map_mask = _encode(
        params, textual_input, textual_mask, visual_input)

    vis = jnp.tanh(jnp.einsum('oh,bhp->bop', params['w_fv'], map_h_flat)
                   + params['b_fv'][None])                             # (B, H, P)
    fused = txt_h[:, :, :, None] * vis[:, None]                        # (B, S, H, P)
    norm = jnp.sqrt(jnp.sum(fused * fused, axis=2, keepdims=True))
    fused = fused / jnp.maximum(norm, 1e-12) * map_mask_flat[:, None]

    mapped = jnp.maximum(
        jnp.einsum('oh,bshp->bsop', params['w_map'], fused)
        + params['b_map'][None, None], 0.0) * map_mask_flat[:, None]   # (B, S, H, P)

    pred = jax.nn.sigmoid(
        jnp.einsum('oh,bshp->bsop', params['w_pred'], mapped)
        + params['b_pred'][None, None]) * map_mask_flat[:, None]
    pred1 = (jnp.einsum('oh,bshp->bsop', params['w_pred1'], mapped)
             + params['b_pred1'][None, None]) * map_mask_flat[:, None]
    pred2 = (jnp.einsum('oh,bshp->bsop', params['w_pred2'], mapped)
             + params['b_pred2'][None, None]) * map_mask_flat[:, None]

    valid = tmp_mask[:, :, None, None].astype(bool)
    merged = jnp.max(jnp.where(valid, pred, -1e30), axis=1)            # (B, 1, P)

    return (merged.reshape(B, 1, N, N), map_mask,
            [pred.reshape(B, S, 1, N, N),
             pred1.reshape(B, S, 1, N, N),
             pred2.reshape(B, S, 1, N, N)])


# ----------------------------------------------------------------------------
if __name__ == "__main__":
    key = jax.random.PRNGKey(0)
    ks = jax.random.split(key, 16)
    params = {
        'w_frame': 0.1 * jax.random.normal(ks[0], (H, D_VIS), jnp.float32),
        'b_frame': 0.1 * jax.random.normal(ks[1], (H,), jnp.float32),
        'w_txt':   0.1 * jax.random.normal(ks[2], (D_TXT, H), jnp.float32),
        'b_txt':   0.1 * jax.random.normal(ks[3], (H,), jnp.float32),
        'w_fv':    0.1 * jax.random.normal(ks[4], (H, H), jnp.float32),
        'b_fv':    0.1 * jax.random.normal(ks[5], (H, 1), jnp.float32),
        'w_map':   0.1 * jax.random.normal(ks[6], (H, H), jnp.float32),
        'b_map':   0.1 * jax.random.normal(ks[7], (H, 1), jnp.float32),
        'w_pred':  0.1 * jax.random.normal(ks[8], (1, H), jnp.float32),
        'b_pred':  0.1 * jax.random.normal(ks[9], (1, 1), jnp.float32),
        'w_pred1': 0.1 * jax.random.normal(ks[10], (1, H), jnp.float32),
        'b_pred1': 0.1 * jax.random.normal(ks[11], (1, 1), jnp.float32),
        'w_pred2': 0.1 * jax.random.normal(ks[12], (1, H), jnp.float32),
        'b_pred2': 0.1 * jax.random.normal(ks[13], (1, 1), jnp.float32),
    }

    textual_input = jax.random.normal(ks[14], (B, S, L, D_TXT), jnp.float32)
    visual_input = jax.random.normal(ks[15], (B, T, D_VIS), jnp.float32)

    # deterministic word masks; sentence (b=0, s=2) is fully empty (tests the
    # valid-sentence filtering of the merged max); every batch has >=1 valid sentence.
    lengths = np.array([[5, 3, 0], [2, 5, 4]], dtype=np.int32)
    tmask = np.zeros((B, S, L, 1), np.float32)
    for b in range(B):
        for s in range(S):
            tmask[b, s, :lengths[b, s], 0] = 1.0
    textual_mask = jnp.asarray(tmask)

    merged, map_mask, preds = dual_mil_pallas(params, textual_input, textual_mask, visual_input)
    jax.block_until_ready(merged)

    merged_r, _, preds_r = dual_mil_reference(params, textual_input, textual_mask, visual_input)
    np.testing.assert_allclose(np.asarray(merged), np.asarray(merged_r), atol=2e-3, rtol=2e-2)
    np.testing.assert_allclose(np.asarray(preds[0]), np.asarray(preds_r[0]), atol=2e-3, rtol=2e-2)
    np.testing.assert_allclose(np.asarray(preds[1]), np.asarray(preds_r[1]), atol=2e-3, rtol=2e-2)
    np.testing.assert_allclose(np.asarray(preds[2]), np.asarray(preds_r[2]), atol=2e-3, rtol=2e-2)

    print("KERNEL_OK")
</pallas_src>

<mosaic_0001>
module attributes {stable_mosaic.version = 11 : i64} {
  func.func @_dual_mil_kernel(%arg0: i32, %arg1: memref<2x3xi32, #tpu.memory_space<smem>>, %arg2: memref<1x32x128xf32, #tpu.memory_space<vmem>>, %arg3: memref<32x128xf32, #tpu.memory_space<vmem>>, %arg4: memref<1x128xf32, #tpu.memory_space<vmem>>, %arg5: memref<32x32xf32, #tpu.memory_space<vmem>>, %arg6: memref<32x1xf32, #tpu.memory_space<vmem>>, %arg7: memref<32x32xf32, #tpu.memory_space<vmem>>, %arg8: memref<32x1xf32, #tpu.memory_space<vmem>>, %arg9: memref<3x32xf32, #tpu.memory_space<vmem>>, %arg10: memref<3x1xf32, #tpu.memory_space<vmem>>, %arg11: memref<1x3x128xf32, #tpu.memory_space<vmem>>, %arg12: memref<1x128xf32, #tpu.memory_space<vmem>>, %arg13: memref<32x128xf32, #tpu.memory_space<vmem>>) attributes {dimension_semantics = [#tpu.dimension_semantics<arbitrary>], iteration_bounds = array<i64: 3>, scalar_prefetch = 1 : i64, scratch_operands = 1 : i64, tpu.core_type = #tpu.core_type<tc>, window_params = [{transform_indices = @transform_0, window_bounds = array<i64: 1, 32, 128>}, {pipeline_mode = #tpu.pipeline_mode<synchronous>, transform_indices = @transform_1, window_bounds = array<i64: 32, 128>}, {pipeline_mode = #tpu.pipeline_mode<synchronous>, transform_indices = @transform_2, window_bounds = array<i64: 1, 128>}, {pipeline_mode = #tpu.pipeline_mode<synchronous>, transform_indices = @transform_3, window_bounds = array<i64: 32, 32>}, {pipeline_mode = #tpu.pipeline_mode<synchronous>, transform_indices = @transform_4, window_bounds = array<i64: 32, 1>}, {pipeline_mode = #tpu.pipeline_mode<synchronous>, transform_indices = @transform_5, window_bounds = array<i64: 32, 32>}, {pipeline_mode = #tpu.pipeline_mode<synchronous>, transform_indices = @transform_6, window_bounds = array<i64: 32, 1>}, {pipeline_mode = #tpu.pipeline_mode<synchronous>, transform_indices = @transform_7, window_bounds = array<i64: 3, 32>}, {pipeline_mode = #tpu.pipeline_mode<synchronous>, transform_indices = @transform_8, window_bounds = array<i64: 3, 1>}, {transform_indices = @transform_9, window_bounds = array<i64: 1, 3, 128>}, {pipeline_mode = #tpu.pipeline_mode<synchronous>, transform_indices = @transform_10, window_bounds = array<i64: 1, 128>}]} {
    %c0 = arith.constant 0 : index
    %c0_0 = arith.constant 0 : index
    %0 = vector.load %arg4[%c0, %c0_0] : memref<1x128xf32, #tpu.memory_space<vmem>>, vector<1x128xf32>
    %c0_i32 = arith.constant 0 : i32
    %1 = arith.cmpi eq, %arg0, %c0_i32 : i32
    %2 = arith.extui %1 : i1 to i32
    %c0_i32_1 = arith.constant 0 : i32
    %3 = arith.cmpi ne, %2, %c0_i32_1 : i32
    scf.if %3 {
      %c0_35 = arith.constant 0 : index
      %c0_36 = arith.constant 0 : index
      %76 = vector.load %arg5[%c0_35, %c0_36] : memref<32x32xf32, #tpu.memory_space<vmem>>, vector<32x32xf32>
      %c0_37 = arith.constant 0 : index
      %c0_38 = arith.constant 0 : index
      %77 = vector.load %arg3[%c0_37, %c0_38] : memref<32x128xf32, #tpu.memory_space<vmem>>, vector<32x128xf32>
      %cst_39 = arith.constant dense<0.000000e+00> : vector<32x128xf32>
      %78 = tpu.matmul %76, %77, %cst_39 {dimension_numbers = #tpu.dot_dimension_numbers<[1], [0], [0], [1], [0, 0, 1, 1], [], []>} : vector<32x32xf32>, vector<32x128xf32>, vector<32x128xf32> -> vector<32x128xf32>
      %c0_40 = arith.constant 0 : index
      %c0_41 = arith.constant 0 : index
      %79 = vector.load %arg6[%c0_40, %c0_41] : memref<32x1xf32, #tpu.memory_space<vmem>>, vector<32x1xf32>
      %80 = vector.broadcast %79 : vector<32x1xf32> to vector<32x128xf32>
      %81 = arith.addf %78, %80 : vector<32x128xf32>
      %82 = math.tanh %81 : vector<32x128xf32>
      %c0_42 = arith.constant 0 : index
      %c0_43 = arith.constant 0 : index
      %83 = vector.load %arg13[%c0_42, %c0_43] : memref<32x128xf32, #tpu.memory_space<vmem>>, vector<32x128xf32>
      tpu.vector_store %arg13[%c0_42, %c0_43], %82 {strides = array<i32>} : memref<32x128xf32, #tpu.memory_space<vmem>>, vector<32x128xf32>,
      %cst_44 = arith.constant -1.000000e+30 : f32
      %84 = vector.broadcast %cst_44 : f32 to vector<1x128xf32>
      %c0_45 = arith.constant 0 : index
      %c0_46 = arith.constant 0 : index
      %85 = vector.load %arg12[%c0_45, %c0_46] : memref<1x128xf32, #tpu.memory_space<vmem>>, vector<1x128xf32>
      tpu.vector_store %arg12[%c0_45, %c0_46], %84 {strides = array<i32>} : memref<1x128xf32, #tpu.memory_space<vmem>>, vector<1x128xf32>,
    } else {
    }
    %c0_2 = arith.constant 0 : index
    %c0_3 = arith.constant 0 : index
    %4 = vector.load %arg13[%c0_2, %c0_3] : memref<32x128xf32, #tpu.memory_space<vmem>>, vector<32x128xf32>
    %c0_4 = arith.constant 0 : index
    %c0_5 = arith.constant 0 : index
    %c0_6 = arith.constant 0 : index
    %5 = vector.load %arg2[%c0_4, %c0_5, %c0_6] : memref<1x32x128xf32, #tpu.memory_space<vmem>>, vector<1x32x128xf32>
    %6 = vector.shape_cast %5 : vector<1x32x128xf32> to vector<32x128xf32>
    %7 = arith.mulf %4, %6 : vector<32x128xf32>
    %8 = arith.mulf %7, %7 : vector<32x128xf32>
    %cst = arith.constant dense<0.000000e+00> : vector<128xf32>
    %9 = vector.multi_reduction <add>, %8, %cst [0] : vector<32x128xf32> to vector<128xf32>
    %10 = vector.shape_cast %9 : vector<128xf32> to vector<1x128xf32>
    %cst_7 = arith.constant 1.000000e-24 : f32
    %11 = vector.broadcast %cst_7 : f32 to vector<1x128xf32>
    %12 = arith.maximumf %10, %11 : vector<1x128xf32>
    %13 = math.rsqrt %12 : vector<1x128xf32>
    %14 = vector.broadcast %13 : vector<1x128xf32> to vector<32x128xf32>
    %15 = arith.mulf %7, %14 : vector<32x128xf32>
    %16 = vector.broadcast %0 : vector<1x128xf32> to vector<32x128xf32>
    %17 = arith.mulf %15, %16 : vector<32x128xf32>
    %c0_8 = arith.constant 0 : index
    %c0_9 = arith.constant 0 : index
    %18 = vector.load %arg7[%c0_8, %c0_9] : memref<32x32xf32, #tpu.memory_space<vmem>>, vector<32x32xf32>
    %cst_10 = arith.constant dense<0.000000e+00> : vector<32x128xf32>
    %19 = tpu.matmul %18, %17, %cst_10 {dimension_numbers = #tpu.dot_dimension_numbers<[1], [0], [0], [1], [0, 0, 1, 1], [], []>} : vector<32x32xf32>, vector<32x128xf32>, vector<32x128xf32> -> vector<32x128xf32>
    %c0_11 = arith.constant 0 : index
    %c0_12 = arith.constant 0 : index
    %20 = vector.load %arg8[%c0_11, %c0_12] : memref<32x1xf32, #tpu.memory_space<vmem>>, vector<32x1xf32>
    %21 = vector.broadcast %20 : vector<32x1xf32> to vector<32x128xf32>
    %22 = arith.addf %19, %21 : vector<32x128xf32>
    %cst_13 = arith.constant 0.000000e+00 : f32
    %23 = vector.broadcast %cst_13 : f32 to vector<32x128xf32>
    %24 = arith.maximumf %22, %23 : vector<32x128xf32>
    %25 = vector.broadcast %0 : vector<1x128xf32> to vector<32x128xf32>
    %26 = arith.mulf %24, %25 : vector<32x128xf32>
    %c0_14 = arith.constant 0 : index
    %c0_15 = arith.constant 0 : index
    %27 = vector.load %arg9[%c0_14, %c0_15] : memref<3x32xf32, #tpu.memory_space<vmem>>, vector<3x32xf32>
    %cst_16 = arith.constant dense<0.000000e+00> : vector<3x128xf32>
    %28 = tpu.matmul %27, %26, %cst_16 {dimension_numbers = #tpu.dot_dimension_numbers<[1], [0], [0], [1], [0, 0, 1, 1], [], []>} : vector<3x32xf32>, vector<32x128xf32>, vector<3x128xf32> -> vector<3x128xf32>
    %c0_17 = arith.constant 0 : index
    %c0_18 = arith.constant 0 : index
    %29 = vector.load %arg10[%c0_17, %c0_18] : memref<3x1xf32, #tpu.memory_space<vmem>>, vector<3x1xf32>
    %30 = vector.broadcast %29 : vector<3x1xf32> to vector<3x128xf32>
    %31 = arith.addf %28, %30 : vector<3x128xf32>
    %32 = tpu.iota {dimensions = array<i32: 0>} : vector<3x128xi32>
    %c0_i32_19 = arith.constant 0 : i32
    %33 = vector.broadcast %c0_i32_19 : i32 to vector<3x128xi32>
    %34 = arith.cmpi eq, %32, %33 : vector<3x128xi32>
    %35 = arith.negf %31 : vector<3x128xf32>
    %36 = math.exp %35 : vector<3x128xf32>
    %cst_20 = arith.constant 1.000000e+00 : f32
    %37 = vector.broadcast %cst_20 : f32 to vector<3x128xf32>
    %38 = arith.addf %37, %36 : vector<3x128xf32>
    %39 = arith.divf %37, %38 : vector<3x128xf32>
    %40 = arith.select %34, %39, %31 : vector<3x128xi1>, vector<3x128xf32>
    %41 = vector.broadcast %0 : vector<1x128xf32> to vector<3x128xf32>
    %42 = arith.mulf %40, %41 : vector<3x128xf32>
    %c0_21 = arith.constant 0 : index
    %c0_22 = arith.constant 0 : index
    %c0_23 = arith.constant 0 : index
    %43 = vector.load %arg11[%c0_21, %c0_22, %c0_23] : memref<1x3x128xf32, #tpu.memory_space<vmem>>, vector<1x3x128xf32>
    %44 = vector.shape_cast %43 : vector<1x3x128xf32> to vector<3x128xf32>
    %45 = vector.shape_cast %42 : vector<3x128xf32> to vector<1x3x128xf32>
    tpu.vector_store %arg11[%c0_21, %c0_22, %c0_23], %45 {strides = array<i32>} : memref<1x3x128xf32, #tpu.memory_space<vmem>>, vector<1x3x128xf32>,
    %46 = tpu.iota {dimensions = array<i32: 1>} : vector<1x128xi32>
    %false = arith.constant false
    %47 = vector.broadcast %false : i1 to vector<1x128xi1>
    %c0_24 = arith.constant 0 : index
    %48 = arith.index_cast %arg0 : i32 to index
    %49 = memref.load %arg1[%c0_24, %48] : memref<2x3xi32, #tpu.memory_space<smem>>
    %c0_i32_25 = arith.constant 0 : i32
    %50 = arith.cmpi sgt, %49, %c0_i32_25 : i32
    %c0_i32_26 = arith.constant 0 : i32
    %51 = vector.broadcast %c0_i32_26 : i32 to vector<1x128xi32>
    %52 = arith.cmpi sge, %46, %51 : vector<1x128xi32>
    %c64_i32 = arith.constant 64 : i32
    %53 = vector.broadcast %c64_i32 : i32 to vector<1x128xi32>
    %54 = arith.cmpi slt, %46, %53 : vector<1x128xi32>
    %55 = arith.andi %52, %54 : vector<1x128xi1>
    %56 = vector.broadcast %50 : i1 to vector<1x128xi1>
    %57 = arith.andi %55, %56 : vector<1x128xi1>
    %58 = arith.ori %47, %57 : vector<1x128xi1>
    %c1 = arith.constant 1 : index
    %59 = arith.index_cast %arg0 : i32 to index
    %60 = memref.load %arg1[%c1, %59] : memref<2x3xi32, #tpu.memory_space<smem>>
    %c0_i32_27 = arith.constant 0 : i32
    %61 = arith.cmpi sgt, %60, %c0_i32_27 : i32
    %c64_i32_28 = arith.constant 64 : i32
    %62 = vector.broadcast %c64_i32_28 : i32 to vector<1x128xi32>
    %63 = arith.cmpi sge, %46, %62 : vector<1x128xi32>
    %c128_i32 = arith.constant 128 : i32
    %64 = vector.broadcast %c128_i32 : i32 to vector<1x128xi32>
    %65 = arith.cmpi slt, %46, %64 : vector<1x128xi32>
    %66 = arith.andi %63, %65 : vector<1x128xi1>
    %67 = vector.broadcast %61 : i1 to vector<1x128xi1>
    %68 = arith.andi %66, %67 : vector<1x128xi1>
    %69 = arith.ori %58, %68 : vector<1x128xi1>
    %70 = vector.extract_strided_slice %42 {offsets = [0, 0], sizes = [1, 128], strides = [1, 1]} : vector<3x128xf32> to vector<1x128xf32>
    %c0_29 = arith.constant 0 : index
    %c0_30 = arith.constant 0 : index
    %71 = vector.load %arg12[%c0_29, %c0_30] : memref<1x128xf32, #tpu.memory_space<vmem>>, vector<1x128xf32>
    %72 = arith.maximumf %71, %70 : vector<1x128xf32>
    %c0_31 = arith.constant 0 : index
    %c0_32 = arith.constant 0 : index
    %73 = vector.load %arg12[%c0_31, %c0_32] : memref<1x128xf32, #tpu.memory_space<vmem>>, vector<1x128xf32>
    %74 = arith.select %69, %72, %73 : vector<1x128xi1>, vector<1x128xf32>
    %c0_33 = arith.constant 0 : index
    %c0_34 = arith.constant 0 : index
    %75 = vector.load %arg12[%c0_33, %c0_34] : memref<1x128xf32, #tpu.memory_space<vmem>>, vector<1x128xf32>
    tpu.vector_store %arg12[%c0_33, %c0_34], %74 {strides = array<i32>} : memref<1x128xf32, #tpu.memory_space<vmem>>, vector<1x128xf32>,
    return
  }
  func.func @transform_0(%arg0: i32, %arg1: memref<2x3xi32, #tpu.memory_space<smem>>) -> (i32, i32, i32) {
    %c0_i32 = arith.constant 0 : i32
    %c0_i32_0 = arith.constant 0 : i32
    %c0_i32_1 = arith.constant 0 : i32
    return %arg0, %c0_i32, %c0_i32_0 : i32, i32, i32
  }
  func.func @transform_1(%arg0: i32, %arg1: memref<2x3xi32, #tpu.memory_space<smem>>) -> (i32, i32) {
    %c0_i32 = arith.constant 0 : i32
    %c0_i32_0 = arith.constant 0 : i32
    %c0_i32_1 = arith.constant 0 : i32
    return %c0_i32, %c0_i32_0 : i32, i32
  }
  func.func @transform_2(%arg0: i32, %arg1: memref<2x3xi32, #tpu.memory_space<smem>>) -> (i32, i32) {
    %c0_i32 = arith.constant 0 : i32
    %c0_i32_0 = arith.constant 0 : i32
    %c0_i32_1 = arith.constant 0 : i32
    return %c0_i32, %c0_i32_0 : i32, i32
  }
  func.func @transform_3(%arg0: i32, %arg1: memref<2x3xi32, #tpu.memory_space<smem>>) -> (i32, i32) {
    %c0_i32 = arith.constant 0 : i32
    %c0_i32_0 = arith.constant 0 : i32
    %c0_i32_1 = arith.constant 0 : i32
    return %c0_i32, %c0_i32_0 : i32, i32
  }
  func.func @transform_4(%arg0: i32, %arg1: memref<2x3xi32, #tpu.memory_space<smem>>) -> (i32, i32) {
    %c0_i32 = arith.constant 0 : i32
    %c0_i32_0 = arith.constant 0 : i32
    %c0_i32_1 = arith.constant 0 : i32
    return %c0_i32, %c0_i32_0 : i32, i32
  }
  func.func @transform_5(%arg0: i32, %arg1: memref<2x3xi32, #tpu.memory_space<smem>>) -> (i32, i32) {
    %c0_i32 = arith.constant 0 : i32
    %c0_i32_0 = arith.constant 0 : i32
    %c0_i32_1 = arith.constant 0 : i32
    return %c0_i32, %c0_i32_0 : i32, i32
  }
  func.func @transform_6(%arg0: i32, %arg1: memref<2x3xi32, #tpu.memory_space<smem>>) -> (i32, i32) {
    %c0_i32 = arith.constant 0 : i32
    %c0_i32_0 = arith.constant 0 : i32
    %c0_i32_1 = arith.constant 0 : i32
    return %c0_i32, %c0_i32_0 : i32, i32
  }
  func.func @transform_7(%arg0: i32, %arg1: memref<2x3xi32, #tpu.memory_space<smem>>) -> (i32, i32) {
    %c0_i32 = arith.constant 0 : i32
    %c0_i32_0 = arith.constant 0 : i32
    %c0_i32_1 = arith.constant 0 : i32
    return %c0_i32, %c0_i32_0 : i32, i32
  }
  func.func @transform_8(%arg0: i32, %arg1: memref<2x3xi32, #tpu.memory_space<smem>>) -> (i32, i32) {
    %c0_i32 = arith.constant 0 : i32
    %c0_i32_0 = arith.constant 0 : i32
    %c0_i32_1 = arith.constant 0 : i32
    return %c0_i32, %c0_i32_0 : i32, i32
  }
  func.func @transform_9(%arg0: i32, %arg1: memref<2x3xi32, #tpu.memory_space<smem>>) -> (i32, i32, i32) {
    %c0_i32 = arith.constant 0 : i32
    %c0_i32_0 = arith.constant 0 : i32
    %c0_i32_1 = arith.constant 0 : i32
    return %arg0, %c0_i32, %c0_i32_0 : i32, i32, i32
  }
  func.func @transform_10(%arg0: i32, %arg1: memref<2x3xi32, #tpu.memory_space<smem>>) -> (i32, i32) {
    %c0_i32 = arith.constant 0 : i32
    %c0_i32_0 = arith.constant 0 : i32
    %c0_i32_1 = arith.constant 0 : i32
    return %c0_i32, %c0_i32_0 : i32, i32
  }
}

</mosaic_0001>

<bundles_post_ra>
// kernel: tpu_custom_call.1
= control target key start
LH: loop header
LB: loop body
LE: loop exit
PB: predicated region body
PF: predicated region fallthrough
CT: control target
= control target key end

     0   :  { %s1144_s20 = smov [#allocation4]   ;;  %s1476_s0 = inlined_call_operand.hbm [shape: s32[2,3], index: 0, kind: input, shape index: {}]   ;;  %s1477_s1 = inlined_call_operand.hbm [shape: f32[3,32,128], index: 1, kind: input, shape index: {}]   ;;  %s1478_s2 = inlined_call_operand.vmem [shape: f32[32,128], index: 2, kind: input, shape index: {}]   ;;  %s1479_s3 = inlined_call_operand.vmem [shape: f32[1,128], index: 3, kind: input, shape index: {}]   ;;  %s1480_s4 = inlined_call_operand.vmem [shape: f32[32,32], index: 4, kind: input, shape index: {}]   ;;  %s1481_s5 = inlined_call_operand.vmem [shape: f32[32,1], index: 5, kind: input, shape index: {}]   ;;  %s1482_s6 = inlined_call_operand.hbm [shape: f32[32,32], index: 6, kind: input, shape index: {}]   ;;  %s1483_s7 = inlined_call_operand.vmem [shape: f32[32,1], index: 7, kind: input, shape index: {}]   ;;  %s1484_s8 = inlined_call_operand.vmem [shape: f32[3,32], index: 8, kind: input, shape index: {}]   ;;  %s1485_s9 = inlined_call_operand.vmem [shape: f32[3,1], index: 9, kind: input, shape index: {}]   ;;  %s1486_s10 = inlined_call_operand.hbm [shape: f32[3,3,128], index: 10, kind: output, shape index: {0}]   ;;  %s1487_s11 = inlined_call_operand.hbm [shape: f32[1,128], index: 11, kind: output, shape index: {1}]  }
   0x1   :  { %1493 = sst [smem:[#allocation21_spill]] %s1482_s6  ;;  %s18_s19 = sshll.u32 %s1476_s0, 4  ;;  %s19_s19 = int_to_ptr.hbm [resolvable:$true] %s18_s19 }
   0x2   :  { %21 = dma.hbm_to_smem %s19_s19, 32, %s1144_s20, [#allocation3] }
   0x3   :  { %1110 = dma.done.wait [#allocation3], 32 }
   0x4   :  { %1111 = vsyncadd [#allocation3], 4294967264 }
   0x5   :  { %24 = sfence }
   0x6   :  { %25 = vsyncpa [#allocation6], 0 }
   0x7   :  { %27 = vsyncpa [#allocation6 + $0x1], 0 }
   0x8   :  { %28 = vsyncpa [#allocation9], 0 }
   0x9   :  { %29 = vsyncpa [#allocation7], 0 }
   0xa   :  { %31 = vsyncpa [#allocation7 + $0x1], 0 }
   0xb   :  { %32 = vsyncpa [#allocation12], 0  ;;  %s1215_s21 = smov 0   ;;  %s1217_s22 = smov 0  }
   0xc   :  { %s1219_s23 = smov 0   ;;  %s1221_s24 = smov 0  }
   0xd LB: > { %1494 = sst [smem:[#allocation18_spill]] %s1138_s23  ;;  %s1236_s0 = sadd.s32 4294967295, %s1142_s24   ;;  %s1142_s24 = sphi %s1221_s24, %s1518_s24   ;;  %s1138_s23 = sphi %s1219_s23, %s1515_s23   ;;  %s1134_s22 = sphi %s1217_s22, %s1517_s22   ;;  %s1130_s21 = sphi %s1215_s21, %s1516_s21  }
   0xe   : > { %s825_s25 = sadd.s32 4294967294, %s1142_s24   ;;  %p58_p0 = scmp.ne.s32.totalorder %s1134_s22, %s1130_s21 }
   0xf   : > { %p59_p1 = scmp.eq.s32.totalorder %s1236_s0, 0  ;;  %p1492_p2 = scmp.eq.s32.totalorder %s1236_s0, 2 }
  0x10   : > { %p256_p3 = scmp.eq.s32.totalorder %s825_s25, 2  ;;  %p826_p5 = scmp.ge.s32.totalorder %s1142_s24, 1 }
  0x11   : > { %p1245_p4 = por %p59_p1, %p58_p0  ;;  %p284_p7 = scmp.lt.s32.totalorder %s1142_s24, 4 }
  0x12   : > { %p1250_p6 = por %p256_p3, %p58_p0  ;;  %s1498_s6 = sld [smem:[#allocation21_spill]] }
  0x13   : > { %p1259_p9 = pnand %p826_p5, %p284_p7  ;;  %s1145_s13 = smov [#allocation8]  }
  0x14   : > { %s1496_s27 = scalar_select %p1250_p6, 1, 0 }
  0x15   : > { %p889_p10 = pneg %p1259_p9  ;;  %s309_s14 = sshll.u32 %s1145_s13, 4  ;;  %s310_s14 = int_to_ptr.vmem [resolvable:$true] %s309_s14 }
  0x16   : > { %1497 = sst [smem:[#allocation19_spill]] %s1496_s27  ;;  %s1268_s15 = sadd.s32 1, %s1142_s24  }
  0x17   : > { %p890_p11 = pnand %p889_p10, %p59_p1  ;;  %s1489_s16 = smov 128  }
  0x18   : > { %s307_s30 = sshll.u32 %s1498_s6, 4  ;;  %s1490_s17 = smov 8   ;;  %s308_s30 = int_to_ptr.hbm [resolvable:$true] %s307_s30 }
  0x19   : > { %892 = dma.hbm_to_vmem [thread:$0]  (!%p890_p11), %s308_s30, 512, %s310_s14, [#allocation9], %s1489_s16, %s1489_s16, %s1490_s17  }
  0x1a   : > { %s42_s18 = ssub.s32 %s1142_s24, %s1268_s15  ;;  %s45_s19 = sadd.s32 1, %s1138_s23 }
  0x1b   : > { %p43_p12 = scmp.eq.s32.totalorder %s42_s18, 0  ;;  %p52_p13 = scmp.ne.s32.totalorder %s1138_s23, %s1134_s22 }
  0x1c   : > { %p53_p0 = scmp.eq.s32.totalorder %s1142_s24, 0  ;;  %p902_p5 = scmp.lt.s32.totalorder %s1142_s24, 3 }
  0x1d   : > { %s1280_s20 = scalar_select %p43_p12, %s1138_s23, %s45_s19  }
  0x1e   : > { %p1284_p3 = por %p1492_p2, %p52_p13  ;;  %s332_s28 = sand.u32 1, %s1138_s23  }
  0x1f   : > { %1500 = sst [smem:[#allocation20_spill]] %s1280_s20  ;;  %s854_s29 = sshll.u32 %s1142_s24, 5 }
  0x20   : > { %p54_p7 = por %p53_p0, %p52_p13  ;;  %s829_s13 = sshll.u32 %s332_s28, 5 }
  0x21   : > { %s341_s30 = scalar_lea.hbm %s1477_s1, %s854_s29  ;;  %s336_s18 = scalar_lea.vmem [#allocation5], %s829_s13 }
  0x22   : > { %s342_s14 = sshll.u32 %s341_s30, 4  ;;  %s344_s16 = sshll.u32 %s336_s18, 4  ;;  %s343_s14 = int_to_ptr.hbm [resolvable:$true] %s342_s14  ;;  %s345_s16 = int_to_ptr.vmem [resolvable:$true] %s344_s16 }
  0x23   : > { %p1294_p10 = pnand %p902_p5, %p54_p7  ;;  %s333_s17 = scalar_lea.sflag [#allocation6], %s332_s28 }
  0x24   : > { %s1008_s20 = sshra.s32 %s343_s14, 4  ;;  %s1015_s29 = scalar_lea.hbm %s1477_s1, 96  ;;  %s1009_s20 = int_to_ptr.hbm [resolvable:$true] %s1008_s20 }
  0x25   : > { %s1010_s23 = scalar_lea.hbm %s1009_s20, 32  ;;  %p1012_p12 = pneg %p1294_p10 }
  0x26   : > { %p1011_p11 = scmp.ne.s32.totalorder %s1009_s20, %s1010_s23  ;;  %p1016_p5 = scmp.lt.s32.totalorder %s1009_s20, %s1477_s1 }
  0x27   : > { %p1017_p7 = scmp.lt.s32.totalorder %s1015_s29, %s1010_s23 }
  0x28   : > { %p1013_p13 = pnand %p1012_p12, %p1011_p11 }
  0x29   : > { %p1018_p2 = por %p1017_p7, %p1016_p5 }
  0x2a   : > { %p1014_p0 = pneg %p1013_p13 }
  0x2c   : > { %p1019_p8 = pnand %p1018_p2, %p1014_p0 }
  0x2e   : > { %1022 = shalt.err (!%p1019_p8)
}
  0x2f   : > { %s1503_s28 = smov 8   ;;  %s1504_s18 = smov 128  }
  0x30   : > { %896 = dma.hbm_to_vmem [thread:$0]  (!%p1294_p10), %s343_s14, 512, %s345_s16, %s333_s17, %s1504_s18, %s1504_s18, %s1503_s28  }
  0x31   : > { %356 = sbr.rel (%p1259_p9) target bundleno = 597 (0x255), region = 56  ;;  %s1314_s6 = sand.u32 (!%p1259_p9), 1, %s1134_s22  }
  0x32   : > { %s833_s20 = sshll.u32 (!%p1259_p9), %s1314_s6, 5  ;;  %s359_s23 = scalar_lea.sflag (!%p1259_p9), [#allocation6], %s1314_s6 }
  0x33   : > { %s1318_s27 = scalar_lea.vmem (!%p1259_p9), [#allocation5], %s833_s20 }
  0x36   : > { %1113 = dma.done.wait (%p1245_p4), %s359_s23, 512  }
  0x37   : > { %1115 = vsyncadd (%p1245_p4), %s359_s23, 4294966784 }
  0x38   : > { %1117 = dma.done.wait (%p59_p1), [#allocation9], 512  }
  0x39   : > { %1119 = vsyncadd (%p59_p1), [#allocation9], 4294966784  ;;  %s835_s12 = sshll.u32 %s1314_s6, 2  ;;  %v1332_v0 = vld [vmem:[%s1479_s3] sm:$0x1]  ;;  %p1505_p2 = scmp.ne.s32.totalorder %s1236_s0, 0 }
  0x3a   : > { %s1334_s14 = scalar_lea.vmem [#allocation10], %s835_s12 }
  0x3b   : > { %409 = sbr.rel (%p1505_p2) target bundleno = 218 (0xda), region = 68 }
  0x40   : > { %v417_v1 = vld [vmem:[%s1478_s2 + $0x18] sm:$0xff]  ;;  %v416_v2 = vld [vmem:[%s1478_s2 + $0x10] sm:$0xff]  ;;  %v415_v3 = vld [vmem:[%s1478_s2 + $0x8] sm:$0xff]  ;;  %vm442_vm0 = vcmask 261120   ;;  %v1148_v9 = vmov 0  }
  0x41   : > { %467 = vmatpush.msra.mxu0 %v417_v1  ;;  %857 = vmatpush.msra.mxu1 %v417_v1  ;;  %v414_v4 = vld [vmem:[%s1478_s2] sm:$0xff]  ;;  %v411_v6 = vld [vmem:[%s1480_s4 + $0x8] sm:$0xff]  ;;  %v412_v7 = vld [vmem:[%s1480_s4 + $0x10] sm:$0xff]  ;;  %v1149_v14 = vmov -1e+30  }
  0x42   : > { %858 = vmatpush.msra.mxu2 %v417_v1  ;;  %859 = vmatpush.msra.mxu3 %v417_v1  ;;  %v410_v5 = vld [vmem:[%s1480_s4] sm:$0xff]  ;;  %v413_v8 = vld [vmem:[%s1480_s4 + $0x18] sm:$0xff]  ;;  %v420_v10 = vld [vmem:[%s1481_s5 + $0x10] sm:$0xff]  ;;  %492 = vst [vmem:[#allocation11] sm:$0x1] %v1149_v14 }
  0x43   : > { %468 = vmatpush.msra.mxu0 %v416_v2  ;;  %860 = vmatpush.msra.mxu1 %v416_v2  ;;  %v418_v11 = vld [vmem:[%s1481_s5] sm:$0xff]  ;;  %v421_v12 = vld [vmem:[%s1481_s5 + $0x18] sm:$0xff]  ;;  %v419_v13 = vld [vmem:[%s1481_s5 + $0x8] sm:$0xff] }
  0x44   : > { %861 = vmatpush.msra.mxu2 %v416_v2  ;;  %862 = vmatpush.msra.mxu3 %v416_v2 }
  0x45   : > { %469 = vmatpush.msra.mxu0 %v415_v3  ;;  %863 = vmatpush.msra.mxu1 %v415_v3 }
  0x46   : > { %864 = vmatpush.msra.mxu2 %v415_v3  ;;  %865 = vmatpush.msra.mxu3 %v415_v3 }
  0x47   : > { %470 = vmatpush.msra.mxu0 %v414_v4  ;;  %866 = vmatpush.msra.mxu1 %v414_v4 }
  0x48   : > { %867 = vmatpush.msra.mxu2 %v414_v4  ;;  %868 = vmatpush.msra.mxu3 %v414_v4 }
  0x49   : > { %948 = vset.pattern.permute.xlu1 %v1148_v9  ;;  %947 = vset.pattern.permute.xlu0 %v1148_v9 }
  0x4a   : > { %837 = vmatmul.msk.f32.vlgmr.msra.gmra.mxu0 %vm442_vm0, %v410_v5  ;;  %838 = vmatmul.msk.f32.vlgmr.msra.gmra.mxu1 %vm442_vm0, %v411_v6 }
  0x4b   : > { %839 = vmatmul.msk.f32.vlgmr.msra.gmra.mxu2 %vm442_vm0, %v412_v7  ;;  %840 = vmatmul.msk.f32.vlgmr.msra.gmra.mxu3 %vm442_vm0, %v413_v8 }
  0x4c   : > { %434 = vperm.xlu1 %948, %v420_v10   ;;  %424 = vperm.xlu0 %947, %v418_v11  }
  0x54   : > { %439 = vperm.xlu1 %948, %v421_v12   ;;  %429 = vperm.xlu0 %947, %v419_v13  }
  0xbe   : > { %v425_v15 = vpop.permute.xlu0 %424  ;;  %v435_v16 = vpop.permute.xlu1 %434 }
  0xc6   : > { %v430_v17 = vpop.permute.xlu0 %429  ;;  %v440_v22 = vpop.permute.xlu1 %439 }
  0xc7   : > { %v472_v18 = vpop.f32.mrf.mxu0  ;;  %v475_v19 = vpop.f32.mrf.mxu1 }
  0xc8   : > { %v473_v20 = vadd.f32 %v472_v18, %v425_v15  ;;  %v476_v21 = vadd.f32 %v475_v19, %v430_v17 }
  0xca   : > { %949 = vtanh.f32 %v473_v20 }
  0xcb   : > { %951 = vtanh.f32 %v476_v21 }
  0xce   : > { %v478_v23 = vpop.f32.mrf.mxu2  ;;  %v481_v24 = vpop.f32.mrf.mxu3 }
  0xcf   : > { %v479_v25 = vadd.f32 %v478_v23, %v435_v16  ;;  %v482_v26 = vadd.f32 %v481_v24, %v440_v22 }
  0xd0   : > { %v950_v27 = vpop.eup %949 }
  0xd1   : > { %v952_v28 = vpop.eup %951  ;;  %488 = vst [vmem:[#allocation2 + $0x10] sm:$0xff] %v950_v27  ;;  %953 = vtanh.f32 %v479_v25 }
  0xd2   : > { %489 = vst [vmem:[#allocation2] sm:$0xff] %v952_v28  ;;  %955 = vtanh.f32 %v482_v26 }
  0xd7   : > { %v954_v29 = vpop.eup %953 }
  0xd8   : > { %v956_v30 = vpop.eup %955  ;;  %490 = vst [vmem:[#allocation2 + $0x18] sm:$0xff] %v954_v29 }
  0xd9   : > { %491 = vst [vmem:[#allocation2 + $0x8] sm:$0xff] %v956_v30 }
  0xda PF: > { %v493_v31 = vld [vmem:[#allocation2 + $0x10] sm:$0xff]  ;;  %v494_v32 = vld [vmem:[#allocation2] sm:$0xff]  ;;  %v498_v36 = vld [vmem:[%s1318_s27 + $0x8] sm:$0xff]  ;;  %v1150_v57 = vmov 0   ;;  %v1391_v5 = vperm.slane %v1332_v0, 0  ;;  %vm568_vm4 = vcmask 261120  }
  0xdb   : > { %v497_v35 = vld [vmem:[%s1318_s27] sm:$0xff]  ;;  %v499_v37 = vld [vmem:[%s1318_s27 + $0x10] sm:$0xff]  ;;  %v500_v38 = vld [vmem:[%s1318_s27 + $0x18] sm:$0xff]  ;;  %v502_v40 = vmul.f32 %v498_v36, %v494_v32  ;;  %957 = vset.pattern.permute.xlu0 %v1150_v57  ;;  %958 = vset.pattern.permute.xlu1 %v1150_v57  ;;  %s684_s17 = sshra.s32 %s1236_s0, 7  ;;  %s689_s19 = sand.u32 127, %s1236_s0 }
  0xdc   : > { %v501_v39 = vmul.f32 %v497_v35, %v493_v31  ;;  %959 = vset.pattern.permute.xlu2 %v1150_v57  ;;  %v547_v58 = vld [vmem:[%s1483_s7 + $0x18] sm:$0xff]  ;;  %v545_v59 = vld [vmem:[%s1483_s7 + $0x8] sm:$0xff]  ;;  %v546_v1 = vld [vmem:[%s1483_s7 + $0x10] sm:$0xff]  ;;  %s855_s27 = sshll.u32 %s684_s17, 7  ;;  %s675_s13 = sld [smem:[#allocation4 + %s1236_s0]] }
  0xdd   : > { %v506_v44 = vmul.f32 %v502_v40, %v502_v40  ;;  %565 = vperm.xlu0 %957, %v547_v58   ;;  %555 = vperm.xlu1 %958, %v545_v59   ;;  %v544_v2 = vld [vmem:[%s1483_s7] sm:$0xff]  ;;  %v542_v0 = vld [vmem:[#allocation8 + $0x10] sm:$0xff]  ;;  %v541_v15 = vld [vmem:[#allocation8 + $0x8] sm:$0xff]  ;;  %s856_s26 = sadd.s32 128, %s855_s27  ;;  %s849_s20 = sshll.u32 %s1236_s0, 2 }
  0xde   : > { %v505_v43 = vmul.f32 %v501_v39, %v501_v39  ;;  %v540_v16 = vld [vmem:[#allocation8] sm:$0xff]  ;;  %v543_v17 = vld [vmem:[#allocation8 + $0x18] sm:$0xff]  ;;  %s690_s29 = sadd.s32 %s856_s26, %s689_s19  ;;  %s716_s16 = scalar_lea.hbm %s1486_s10, %s849_s20 }
  0xdf   : > { %v495_v33 = vld [vmem:[#allocation2 + $0x18] sm:$0xff]  ;;  %v619_v18 = vld [vmem:[%s1485_s9] sm:$0x7]  ;;  %s691_s30 = sld [smem:[#allocation4 + %s690_s29]]  ;;  %s718_s17 = sshll.u32 %s1334_s14, 4  ;;  %s719_s17 = int_to_ptr.vmem [resolvable:$true] %s718_s17 }
  0xe0   : > { %v496_v34 = vld [vmem:[#allocation2 + $0x8] sm:$0xff]  ;;  %v503_v41 = vmul.f32 %v499_v37, %v495_v33  ;;  %v509_v47 = vadd.f32 %v506_v44, %v505_v43  ;;  %622 = vperm.xlu2 %959, %v619_v18   ;;  %s720_s27 = sshll.u32 %s716_s16, 4  ;;  %s1151_s26 = smov [#allocation11]   ;;  %s721_s27 = int_to_ptr.hbm [resolvable:$true] %s720_s27 }
  0xe1   : > { %v504_v42 = vmul.f32 %v500_v38, %v496_v34  ;;  %s730_s19 = sshll.u32 %s1151_s26, 4  ;;  %s1058_s16 = scalar_lea.hbm %s1486_s10, 12  ;;  %s731_s19 = int_to_ptr.vmem [resolvable:$true] %s730_s19 }
  0xe2   : > { %v507_v45 = vmul.f32 %v503_v41, %v503_v41  ;;  %p676_p1 = scmp.gt.s32.totalorder %s675_s13, 0 }
  0xe3   : > { %v508_v46 = vmul.f32 %v504_v42, %v504_v42 }
  0xe4   : > { %v510_v48 = vadd.f32 %v509_v47, %v507_v45  ;;  %s680_s28 = scalar_select %p676_p1, 1, 0  ;;  %v648_v47 = vlaneseq }
  0xe5   : > { %560 = vperm.xlu0 %957, %v546_v1   ;;  %550 = vperm.xlu1 %958, %v544_v2   ;;  %p692_p4 = scmp.gt.s32.totalorder %s691_s30, 0  ;;  %v701_v1 = vld [vmem:[#allocation11] sm:$0x1]  ;;  %s732_s30 = sshll.u32 %s1487_s11, 4  ;;  %s733_s30 = int_to_ptr.hbm [resolvable:$true] %s732_s30 }
  0xe6   : > { %v511_v49 = vadd.f32 %v510_v48, %v508_v46 }
  0xe7   : > { %s696_s18 = scalar_select %p692_p4, 1, 0 }
  0xe8   : > { %v512_v50 = vrot.slane %v511_v49, 4 }
  0xea   : > { %v513_v51 = vadd.f32 %v512_v50, %v511_v49  ;;  %v674_v49 = vand.u32 127, %v648_v47 }
  0xec   : > { %v514_v52 = vrot.slane %v513_v51, 2  ;;  %vm678_vm6 = vcmp.lt.s32.totalorder %v674_v49, 64  ;;  %vm693_vm9 = vcmp.ge.s32.totalorder %v674_v49, 64 }
  0xee   : > { %v515_v53 = vadd.f32 %v514_v52, %v513_v51  ;;  %v681_v51 = vstv %s680_s28  ;;  %v649_v52 = vshrl.u32 %v648_v47, 7  ;;  %s706_s28 = scalar_lea.sflag [#allocation7], %s1314_s6 }
  0xef   : > { %vm682_vm7 = vcmp.eq.s32.totalorder %v681_v51, 1 }
  0xf0   : > { %v516_v54 = vrot.slane %v515_v53, 1  ;;  %vm650_vm11 = vcmp.eq.s32.totalorder %v649_v52, 0  ;;  %vm1420_vm14 = vmand %vm678_vm6, %vm682_vm7 }
  0xf2   : > { %v517_v55 = vadd.f32 %v516_v54, %v515_v53  ;;  %v697_v54 = vstv %s696_s18  ;;  %s1052_s18 = sshra.s32 %s721_s27, 4  ;;  %s1053_s18 = int_to_ptr.hbm [resolvable:$true] %s1052_s18 }
  0xf3   : > { %vm698_vm10 = vcmp.eq.s32.totalorder %v697_v54, 1  ;;  %s1054_s20 = scalar_lea.hbm %s1053_s18, 4  ;;  %p1059_p11 = scmp.lt.s32.totalorder %s1053_s18, %s1486_s10 }
  0xf4   : > { %v518_v56 = vmax.f32 %v517_v55, 1e-24  ;;  %vm1424_vm15 = vmand %vm693_vm9, %vm698_vm10  ;;  %p1055_p8 = scmp.ne.s32.totalorder %s1053_s18, %s1054_s20  ;;  %p1060_p12 = scmp.lt.s32.totalorder %s1058_s16, %s1054_s20 }
  0xf5   : > { %vm700_vm0 = vmor %vm1420_vm14, %vm1424_vm15 }
  0xf6   : > { %960 = vrsqrt.f32 %v518_v56  ;;  %vm525_vm1 = vweird.f32 %v518_v56  ;;  %p1056_p9 = pnand %p1055_p8, %p1284_p3  ;;  %p1061_p13 = por %p1060_p12, %p1059_p11 }
  0xf8   : > { %p1057_p10 = pneg %p1056_p9 }
  0xfa   : > { %p1062_p0 = pnand %p1061_p13, %p1057_p10 }
  0xfc   : > { %v961_v60 = vpop.eup %960 }
  0xfd   : > { %v520_v61 = vmul.f32 %v961_v60, %v518_v56  ;;  %vm526_vm2 = vweird.f32 %v961_v60 }
  0xfe   : > { %vm527_vm3 = vmor %vm525_vm1, %vm526_vm2 }
  0xff   : > { %v521_v62 = vmul.f32 %v961_v60, %v520_v61 }
 0x101   : > { %v522_v63 = vmul.f32 0.5, %v521_v62 }
 0x103   : > { %v523_v3 = vsub.f32 1.5, %v522_v63 }
 0x105   : > { %v524_v4 = vmul.f32 %v961_v60, %v523_v3 }
 0x107   : > { %v528_v6 = vsel %vm527_vm3, %v961_v60, %v524_v4 }
 0x108   : > { %v532_v7 = vmul.f32 %v528_v6, %v504_v42  ;;  %v531_v8 = vmul.f32 %v528_v6, %v503_v41  ;;  %v530_v9 = vmul.f32 %v528_v6, %v502_v40  ;;  %v529_v12 = vmul.f32 %v528_v6, %v501_v39  ;;  %v618_v39 = vld [vmem:[%s1484_s8] sm:$0x7] }
 0x10a   : > { %v539_v10 = vmul.f32 %v1391_v5, %v532_v7  ;;  %v538_v11 = vmul.f32 %v1391_v5, %v531_v8  ;;  %v537_v13 = vmul.f32 %v1391_v5, %v530_v9  ;;  %v536_v14 = vmul.f32 %v1391_v5, %v529_v12 }
 0x10c   : > { %870 = vmatpush.msra.mxu3 %v539_v10  ;;  %869 = vmatpush.msra.mxu2 %v539_v10 }
 0x10d   : > { %593 = vmatpush.msra.mxu0 %v539_v10 }
 0x10e   : > { %872 = vmatpush.msra.mxu3 %v538_v11  ;;  %871 = vmatpush.msra.mxu2 %v538_v11 }
 0x10f   : > { %594 = vmatpush.msra.mxu0 %v538_v11 }
 0x110   : > { %874 = vmatpush.msra.mxu3 %v537_v13  ;;  %873 = vmatpush.msra.mxu2 %v537_v13 }
 0x111   : > { %595 = vmatpush.msra.mxu0 %v537_v13 }
 0x112   : > { %876 = vmatpush.msra.mxu3 %v536_v14  ;;  %875 = vmatpush.msra.mxu2 %v536_v14 }
 0x113   : > { %843 = vmatmul.msk.f32.vlgmr.msra.gmra.mxu3 %vm568_vm4, %v542_v0  ;;  %842 = vmatmul.msk.f32.vlgmr.msra.gmra.mxu2 %vm568_vm4, %v541_v15 }
 0x114   : > { %596 = vmatpush.msra.mxu0 %v536_v14 }
 0x115   : > { %841 = vmatmul.msk.f32.vlgmr.msra.gmra.mxu0 %vm568_vm4, %v540_v16 }
 0x11b   : > { %844 = vmatmul.msk.f32.gmra.mxu3 %vm568_vm4, %v543_v17 }
 0x13a   : > { %v623_v40 = vpop.permute.xlu2 %622 }
 0x14f   : > { %v566_v19 = vpop.permute.xlu0 %565  ;;  %v556_v20 = vpop.permute.xlu1 %555 }
 0x157   : > { %v561_v22 = vpop.permute.xlu0 %560  ;;  %v551_v25 = vpop.permute.xlu1 %550 }
 0x192   : > { %v598_v26 = vpop.f32.mrf.mxu0 }
 0x193   : > { %v599_v31 = vadd.f32 %v598_v26, %v551_v25 }
 0x195   : > { %v610_v35 = vmax.f32 %v599_v31, 0.0 }
 0x196   : > { %v604_v21 = vpop.f32.mrf.mxu3  ;;  %v601_v23 = vpop.f32.mrf.mxu2 }
 0x197   : > { %v605_v24 = vadd.f32 %v604_v21, %v561_v22  ;;  %v602_v28 = vadd.f32 %v601_v23, %v556_v20  ;;  %v614_v38 = vmul.f32 %v610_v35, %v1391_v5 }
 0x199   : > { %v612_v30 = vmax.f32 %v605_v24, 0.0  ;;  %v611_v33 = vmax.f32 %v602_v28, 0.0 }
 0x19b   : > { %v616_v36 = vmul.f32 %v612_v30, %v1391_v5  ;;  %v615_v37 = vmul.f32 %v611_v33, %v1391_v5 }
 0x19e   : > { %v607_v27 = vpop.f32.mrf.mxu3 }
 0x19f   : > { %v608_v29 = vadd.f32 %v607_v27, %v566_v19 }
 0x1a1   : > { %v613_v32 = vmax.f32 %v608_v29, 0.0 }
 0x1a3   : > { %v617_v34 = vmul.f32 %v613_v32, %v1391_v5 }
 0x1a5   : > { %640 = vmatpush.msra.mxu1 %v617_v34 }
 0x1a7   : > { %641 = vmatpush.msra.mxu1 %v616_v36 }
 0x1a9   : > { %642 = vmatpush.msra.mxu1 %v615_v37 }
 0x1ab   : > { %643 = vmatpush.msra.mxu1 %v614_v38 }
 0x1ac   : > { %845 = vmatmul.msk.f32.vlgmr.msra.gmra.mxu1 %vm568_vm4, %v618_v39 }
 0x229   : > { %v645_v41 = vpop.f32.mrf.mxu1 }
 0x22a   : > { %v646_v42 = vadd.f32 %v645_v41, %v623_v40 }
 0x22c   : > { %v846_v43 = vmul.f32 -1.442695, %v646_v42 }
 0x22e   : > { %962 = vpow2.f32 %v846_v43 }
 0x234   : > { %v963_v44 = vpop.eup %962 }
 0x235   : > { %v654_v45 = vadd.f32 1.0, %v963_v44 }
 0x237   : > { %964 = vrcp.f32 %v654_v45  ;;  %v666_v53 = vand.u32 2147483648, %v654_v45  ;;  %v664_v56 = vand.u32 2147483647, %v654_v45  ;;  %vm660_vm8 = vweird.f32 %v654_v45 }
 0x239   : > { %v667_v58 = vor.u32 1.1754944e-38, %v666_v53  ;;  %vm665_vm13 = vcmp.eq.f32.partialorder %v664_v56, 8.507059e+37 }
 0x23d   : > { %v965_v46 = vpop.eup %964 }
 0x23e   : > { %v656_v48 = vmul.f32 %v965_v46, %v654_v45  ;;  %vm661_vm5 = vweird.f32 %v965_v46 }
 0x23f   : > { %vm662_vm12 = vmor %vm660_vm8, %vm661_vm5 }
 0x240   : > { %v657_v50 = vsub.f32 1.0, %v656_v48 }
 0x242   : > { %v658_v55 = vmul.f32 %v965_v46, %v657_v50 }
 0x244   : > { %v659_v57 = vadd.f32 %v965_v46, %v658_v55 }
 0x246   : > { %v663_v59 = vsel %vm662_vm12, %v965_v46, %v659_v57 }
 0x247   : > { %v668_v61 = vsel %vm665_vm13, %v667_v58, %v663_v59 }
 0x248   : > { %v670_v63 = vsel %vm650_vm11, %v668_v61, %v646_v42 }
 0x249   : > { %v671_v2 = vmul.f32 %v670_v63, %v1391_v5 }
 0x24b   : > { %672 = vst [vmem:[%s1334_s14] sm:$0x7] %v671_v2  ;;  %v702_v3 = vmax.f32 %v701_v1, %v671_v2 }
 0x24c   : > { %1065 = shalt.err (!%p1062_p0)
}
 0x24d   : > { %883 = dma.vmem_to_hbm [thread:$0]  (%p1284_p3), %s719_s17, 64, %s721_s27, %s706_s28   ;;  %v703_v4 = vsel %vm700_vm0, %v702_v3, %v701_v1 }
 0x24e   : > { %704 = vst [vmem:[#allocation11] sm:$0x1] %v703_v4  ;;  %p1510_p5 = scmp.eq.s32.totalorder %s1236_s0, 2 }
 0x250   : > { %885 = dma.vmem_to_hbm [thread:$0]  (%p1510_p5), %s731_s19, 16, %s733_s30, [#allocation12]  }
 0x251   : > { %p1511_p7 = pmov %p1510_p5 }
 0x252   : > { %p1512_p2 = pmov %p1510_p5 }
 0x253   : > { %1121 = dma.done.wait (%p1511_p7), [#allocation12], 16  }
 0x254   : > { %1123 = vsyncadd (%p1512_p2), [#allocation12], 4294967280 }
 0x255 PF: > { %p906_p1 = scmp.ge.s32.totalorder %s1142_s24, 2  ;;  %s749_s6 = sand.u32 1, %s1130_s21  }
 0x256   : > { %s750_s14 = scalar_lea.sflag [#allocation7], %s749_s6 }
 0x257   : > { %p898_p3 = pnand %p906_p1, %p1250_p6 }
 0x259   : > { %p899_p4 = pneg %p898_p3 }
 0x25b   : > { %1125 = dma.done.wait (%p899_p4), %s750_s14, 64  }
 0x25c   : > { %1127 = vsyncadd (%p899_p4), %s750_s14, 4294967232  ;;  %s1514_s17 = sld [smem:[#allocation18_spill]]  ;;  %p35_p8 = scmp.ge.s32.totalorder %s1268_s15, 5  }
 0x25d   : > { %s1515_s23 = sld [smem:[#allocation20_spill]]  ;;  %s1516_s21 = smov %s1134_s22 }
 0x25e   : > { %s1518_s24 = smov %s1268_s15  ;;  %37 = sbr.rel (!%p35_p8) target bundleno = 13 (0xd), region = 117 }
 0x262   : > { %s1517_s22 = smov %s1514_s17 }
 0x263   :  { %756 = vsyncpa [#allocation6], 1 }
 0x264   :  { %758 = vsyncpa [#allocation6 + $0x1], 1 }
 0x265   :  { %759 = vsyncpa [#allocation9], 1 }
 0x266   :  { %760 = vsyncpa [#allocation7], 1 }
 0x267   :  { %762 = vsyncpa [#allocation7 + $0x1], 1 }
 0x268   :  { %763 = vsyncpa [#allocation12], 1 }

</bundles_post_ra>
